<compile_context>
chip_gen: v5e
topology: v5e:2x2
jax: 0.10.0
libtpu: 0.0.40
codegen_flags: <defaults>
</compile_context>

<pallas_src>
import functools

import jax
import jax.numpy as jnp
from jax import lax
from jax.experimental import pallas as pl
from jax.experimental.pallas import tpu as pltpu

_EPS = 2.220446049250313e-16  # np.finfo(float).eps, as used by CNNDist.FroNorm


def _act(v, kind):
    if kind == "relu":
        return jnp.maximum(v, 0.0)
    if kind == "leaky-relu":
        return jnp.where(v >= 0.0, v, 0.01 * v)
    return v  # ' ' -> NonlinRem: identity


# ---------------- FrontEnd: Conv1d(1, C, (D, 1)) + act == relu(W @ x[b] + b) ----------
def _frontend_kernel(x_ref, w_ref, b_ref, o_ref, *, act_kind):
    x = x_ref[0]                                   # [D, T]
    w = w_ref[...]                                 # [C, D]
    b = b_ref[...]                                 # [C, 1]
    y = jnp.dot(w, x, preferred_element_type=jnp.float32) + b
    o_ref[0] = _act(y, act_kind).astype(o_ref.dtype)


def frontend(x, w, b, act_kind):
    B, D, T = x.shape
    C = w.shape[0]
    kern = functools.partial(_frontend_kernel, act_kind=act_kind)
    return pl.pallas_call(
        kern,
        out_shape=jax.ShapeDtypeStruct((B, C, T), jnp.float32),
        grid=(B,),
        in_specs=[
            pl.BlockSpec((1, D, T), lambda i: (i, 0, 0)),
            pl.BlockSpec((C, D), lambda i: (0, 0)),
            pl.BlockSpec((C, 1), lambda i: (0, 0)),
        ],
        out_specs=pl.BlockSpec((1, C, T), lambda i: (i, 0, 0)),
        compiler_params=pltpu.CompilerParams(dimension_semantics=("parallel",)),
    )(x, w, b)


# ---------------- FroNorm: d[i,j] = sqrt(max(|x_i|^2 + |y_j|^2 - 2 x_i.y_j, 0) + eps) --
def _fronorm_kernel(x_ref, y_ref, o_ref):
    xT = jnp.transpose(x_ref[0])                   # [T, C]
    y = y_ref[0]                                   # [C, T]
    g = jnp.dot(xT, y, preferred_element_type=jnp.float32)   # [T, T] gram matrix
    xn = jnp.sum(xT * xT, axis=1, keepdims=True)   # [T, 1]
    yn = jnp.sum(y * y, axis=0, keepdims=True)     # [1, T]
    d2 = jnp.maximum(xn + yn - 2.0 * g, 0.0) + _EPS
    o_ref[0, 0] = jnp.sqrt(d2).astype(o_ref.dtype)


def fronorm(x, y):
    B, C, T = x.shape
    return pl.pallas_call(
        _fronorm_kernel,
        out_shape=jax.ShapeDtypeStruct((B, 1, T, T), jnp.float32),
        grid=(B,),
        in_specs=[
            pl.BlockSpec((1, C, T), lambda i: (i, 0, 0)),
            pl.BlockSpec((1, C, T), lambda i: (i, 0, 0)),
        ],
        out_specs=pl.BlockSpec((1, 1, T, T), lambda i: (i, 0, 0, 0)),
        compiler_params=pltpu.CompilerParams(dimension_semantics=("parallel",)),
    )(x, y)


# ---------------- Conv2d (valid), scalar weights in SMEM -------------------------------
def _conv2d_kernel(x_ref, w_ref, b_ref, o_ref, *, cin, cout, ksize, hout, wout):
    for co in range(cout):
        acc = jnp.zeros((hout, wout), jnp.float32)
        for ci in range(cin):
            xc = x_ref[0, ci]                      # [H, W]
            for kh in range(ksize):
                for kw in range(ksize):
                    w_s = w_ref[((co * cin + ci) * ksize + kh) * ksize + kw]
                    acc = acc + w_s * xc[kh:kh + hout, kw:kw + wout]
        acc = acc + b_ref[co]
        o_ref[0, co] = acc.astype(o_ref.dtype)


def conv2d(x, w_flat, b, ksize):
    B, Cin, H, W = x.shape
    Cout = b.shape[0]
    Hout, Wout = H - ksize + 1, W - ksize + 1
    kern = functools.partial(_conv2d_kernel, cin=Cin, cout=Cout, ksize=ksize,
                             hout=Hout, wout=Wout)
    return pl.pallas_call(
        kern,
        out_shape=jax.ShapeDtypeStruct((B, Cout, Hout, Wout), jnp.float32),
        grid=(B,),
        in_specs=[
            pl.BlockSpec((1, Cin, H, W), lambda i: (i, 0, 0, 0)),
            pl.BlockSpec(memory_space=pltpu.MemorySpace.SMEM),   # flattened conv weights
            pl.BlockSpec(memory_space=pltpu.MemorySpace.SMEM),   # bias
        ],
        out_specs=pl.BlockSpec((1, Cout, Hout, Wout), lambda i: (i, 0, 0, 0)),
        compiler_params=pltpu.CompilerParams(dimension_semantics=("parallel",)),
    )(x, w_flat, b)


# ---------------- MaxPool2d + nonlinearity ---------------------------------------------
def _pool_act_kernel(x_ref, o_ref, *, nwin, act_kind):
    m = x_ref[0, 0]                                # [C, Hp, Wp]
    for k in range(1, nwin):
        m = jnp.maximum(m, x_ref[0, k])
    o_ref[0] = _act(m, act_kind).astype(o_ref.dtype)


def maxpool_act(y, psize, act_kind):
    B, C, H, W = y.shape
    Hp = (H - psize) // psize + 1
    Wp = (W - psize) // psize + 1
    # Rearrange so each pooling-window offset becomes a leading axis: the kernel then
    # reduces over full blocks only (no strided slices / reshapes inside the kernel).
    yc = y[:, :, :Hp * psize, :Wp * psize]
    yw = yc.reshape(B, C, Hp, psize, Wp, psize)
    yw = jnp.transpose(yw, (0, 3, 5, 1, 2, 4)).reshape(B, psize * psize, C, Hp, Wp)
    kern = functools.partial(_pool_act_kernel, nwin=psize * psize, act_kind=act_kind)
    return pl.pallas_call(
        kern,
        out_shape=jax.ShapeDtypeStruct((B, C, Hp, Wp), jnp.float32),
        grid=(B,),
        in_specs=[pl.BlockSpec((1, psize * psize, C, Hp, Wp),
                               lambda i: (i, 0, 0, 0, 0))],
        out_specs=pl.BlockSpec((1, C, Hp, Wp), lambda i: (i, 0, 0, 0)),
        compiler_params=pltpu.CompilerParams(dimension_semantics=("parallel",)),
    )(yw)


# ---------------- Linear (+ optional nonlinearity) --------------------------------------
def _linear_kernel(x_ref, w_ref, b_ref, o_ref, *, act_kind, apply_act):
    y = jnp.dot(x_ref[...], w_ref[...], preferred_element_type=jnp.float32) + b_ref[...]
    if apply_act:
        y = _act(y, act_kind)
    o_ref[...] = y.astype(o_ref.dtype)


def linear(x, w, b, act_kind, apply_act):
    B, Fin = x.shape
    Fout = w.shape[1]
    kern = functools.partial(_linear_kernel, act_kind=act_kind, apply_act=apply_act)
    return pl.pallas_call(
        kern,
        out_shape=jax.ShapeDtypeStruct((B, Fout), jnp.float32),
        grid=(1,),
        in_specs=[
            pl.BlockSpec((B, Fin), lambda i: (0, 0)),
            pl.BlockSpec((Fin, Fout), lambda i: (0, 0)),
            pl.BlockSpec((1, Fout), lambda i: (0, 0)),
        ],
        out_specs=pl.BlockSpec((B, Fout), lambda i: (0, 0)),
    )(x, w, b)


# ---------------- Full CNNDist forward ---------------------------------------------------
def cnn_dist_forward(params, test, ref, *, ksize, psize, nonlinearity):
    tf = frontend(test, params["fe_w"], params["fe_b"], nonlinearity)   # [B, C, T]
    rf = frontend(ref, params["fe_w"], params["fe_b"], nonlinearity)    # [B, C, T]
    h = fronorm(tf, rf)                                                 # [B, 1, T, T]
    for (w_flat, b) in params["conv"]:
        h = conv2d(h, w_flat, b, ksize)             # Conv2d (valid)
        h = maxpool_act(h, psize, nonlinearity)     # MaxPool2d + nonlinearity
        # TODO(synk): BatchNorm2d not implemented (batchnorm=False config);
        # nn.Dropout is inference-mode identity here (dropout_prob=0.0).
    h = h.reshape(h.shape[0], -1)                   # .view(-1, lsize)
    n_lin = len(params["mlp"])
    for idx, (w, b) in enumerate(params["mlp"]):
        h = linear(h, w, b, nonlinearity, apply_act=(idx != n_lin - 1))
    return h


# ---------------- Pure-JAX reference (for correctness check) ----------------------------
def _reference_forward(params, test, ref, ksize, psize, act):
    fe_w, fe_b = params["fe_w"], params["fe_b"]
    tf = _act(jnp.einsum("cd,bdt->bct", fe_w, test) + fe_b[None, :, :], act)
    rf = _act(jnp.einsum("cd,bdt->bct", fe_w, ref) + fe_b[None, :, :], act)
    g = jnp.einsum("bci,bcj->bij", tf, rf)
    xn = jnp.sum(tf * tf, axis=1)[:, :, None]
    yn = jnp.sum(rf * rf, axis=1)[:, None, :]
    h = jnp.sqrt(jnp.maximum(xn + yn - 2.0 * g, 0.0) + _EPS)[:, None]
    for (w_flat, b) in params["conv"]:
        cin, cout = h.shape[1], b.shape[0]
        w = w_flat.reshape(cout, cin, ksize, ksize)
        h = lax.conv_general_dilated(h, w, (1, 1), "VALID",
                                     dimension_numbers=("NCHW", "OIHW", "NCHW"))
        h = h + b[None, :, None, None]
        h = lax.reduce_window(h, -jnp.inf, lax.max,
                              (1, 1, psize, psize), (1, 1, psize, psize), "VALID")
        h = _act(h, act)
    h = h.reshape(h.shape[0], -1)
    n = len(params["mlp"])
    for i, (w, b) in enumerate(params["mlp"]):
        h = h @ w + b
        if i != n - 1:
            h = _act(h, act)
    return h


if __name__ == "__main__":
    B, D, T = 2, 16, 16            # batch, freqlen, seqlen
    convchannels = [8, 4]          # [front-end channels, conv2d out channels]
    ksize, psize = 3, 2
    hidden_units = [32]
    output_size = 3
    nonlinearity = "relu"

    key = jax.random.PRNGKey(0)
    keys = jax.random.split(key, 16)

    test = jax.random.normal(keys[0], (B, D, T), dtype=jnp.float32)
    ref_in = jax.random.normal(keys[1], (B, D, T), dtype=jnp.float32)

    c_front = convchannels[0]
    params = {
        "fe_w": 0.1 * jax.random.normal(keys[2], (c_front, D), jnp.float32),
        "fe_b": 0.1 * jax.random.normal(keys[3], (c_front, 1), jnp.float32),
        "conv": [],
        "mlp": [],
    }

    conv_ch = [1] + convchannels[1:]
    tsize = fsize = T
    kidx = 4
    for l in range(len(conv_ch) - 1):
        cin, cout = conv_ch[l], conv_ch[l + 1]
        w = 0.1 * jax.random.normal(keys[kidx], (cout, cin, ksize, ksize), jnp.float32)
        kidx += 1
        bb = 0.1 * jax.random.normal(keys[kidx], (cout,), jnp.float32)
        kidx += 1
        params["conv"].append((w.reshape(-1), bb))
        tsize = (tsize - ksize + 1 - (psize - 1) - 1) // psize + 1
        fsize = (fsize - ksize + 1 - (psize - 1) - 1) // psize + 1
    lsize = tsize * fsize * conv_ch[-1]

    dims = [lsize] + hidden_units + [output_size]
    for l in range(len(dims) - 1):
        w = 0.1 * jax.random.normal(keys[kidx], (dims[l], dims[l + 1]), jnp.float32)
        kidx += 1
        bb = 0.1 * jax.random.normal(keys[kidx], (1, dims[l + 1]), jnp.float32)
        kidx += 1
        params["mlp"].append((w, bb))

    out = cnn_dist_forward(params, test, ref_in,
                           ksize=ksize, psize=psize, nonlinearity=nonlinearity)
    out = jax.block_until_ready(out)

    expected = jax.block_until_ready(
        _reference_forward(params, test, ref_in, ksize, psize, nonlinearity))

    assert out.shape == (B, output_size), (out.shape, (B, output_size))
    assert bool(jnp.all(jnp.isfinite(out)))
    assert bool(jnp.allclose(out, expected, rtol=1e-2, atol=1e-2)), float(
        jnp.max(jnp.abs(out - expected)))

    print("KERNEL_OK")
</pallas_src>

<mosaic_0001>
module attributes {stable_mosaic.version = 11 : i64} {
  func.func @_frontend_kernel(%arg0: i32, %arg1: memref<1x16x16xf32, #tpu.memory_space<vmem>>, %arg2: memref<8x16xf32, #tpu.memory_space<vmem>>, %arg3: memref<8x1xf32, #tpu.memory_space<vmem>>, %arg4: memref<1x8x16xf32, #tpu.memory_space<vmem>>) attributes {dimension_semantics = [#tpu.dimension_semantics<parallel>], iteration_bounds = array<i64: 2>, scalar_prefetch = 0 : i64, scratch_operands = 0 : i64, tpu.core_type = #tpu.core_type<tc>, window_params = [{transform_indices = @transform_0, window_bounds = array<i64: 1, 16, 16>}, {pipeline_mode = #tpu.pipeline_mode<synchronous>, transform_indices = @transform_1, window_bounds = array<i64: 8, 16>}, {pipeline_mode = #tpu.pipeline_mode<synchronous>, transform_indices = @transform_2, window_bounds = array<i64: 8, 1>}, {transform_indices = @transform_3, window_bounds = array<i64: 1, 8, 16>}]} {
    %c0 = arith.constant 0 : index
    %c0_0 = arith.constant 0 : index
    %c0_1 = arith.constant 0 : index
    %0 = vector.load %arg1[%c0, %c0_0, %c0_1] : memref<1x16x16xf32, #tpu.memory_space<vmem>>, vector<1x16x16xf32>
    %1 = vector.shape_cast %0 : vector<1x16x16xf32> to vector<16x16xf32>
    %c0_2 = arith.constant 0 : index
    %c0_3 = arith.constant 0 : index
    %2 = vector.load %arg2[%c0_2, %c0_3] : memref<8x16xf32, #tpu.memory_space<vmem>>, vector<8x16xf32>
    %c0_4 = arith.constant 0 : index
    %c0_5 = arith.constant 0 : index
    %3 = vector.load %arg3[%c0_4, %c0_5] : memref<8x1xf32, #tpu.memory_space<vmem>>, vector<8x1xf32>
    %cst = arith.constant dense<0.000000e+00> : vector<8x16xf32>
    %4 = tpu.matmul %2, %1, %cst {dimension_numbers = #tpu.dot_dimension_numbers<[1], [0], [0], [1], [0, 0, 1, 1], [], []>} : vector<8x16xf32>, vector<16x16xf32>, vector<8x16xf32> -> vector<8x16xf32>
    %5 = vector.broadcast %3 : vector<8x1xf32> to vector<8x16xf32>
    %6 = arith.addf %4, %5 : vector<8x16xf32>
    %cst_6 = arith.constant 0.000000e+00 : f32
    %7 = vector.broadcast %cst_6 : f32 to vector<8x16xf32>
    %8 = arith.maximumf %6, %7 : vector<8x16xf32>
    %c0_7 = arith.constant 0 : index
    %c0_8 = arith.constant 0 : index
    %c0_9 = arith.constant 0 : index
    %9 = vector.load %arg4[%c0_7, %c0_8, %c0_9] : memref<1x8x16xf32, #tpu.memory_space<vmem>>, vector<1x8x16xf32>
    %10 = vector.shape_cast %9 : vector<1x8x16xf32> to vector<8x16xf32>
    %11 = vector.shape_cast %8 : vector<8x16xf32> to vector<1x8x16xf32>
    tpu.vector_store %arg4[%c0_7, %c0_8, %c0_9], %11 {strides = array<i32>} : memref<1x8x16xf32, #tpu.memory_space<vmem>>, vector<1x8x16xf32>,
    return
  }
  func.func @transform_0(%arg0: i32) -> (i32, i32, i32) {
    %c0_i32 = arith.constant 0 : i32
    %c0_i32_0 = arith.constant 0 : i32
    %c0_i32_1 = arith.constant 0 : i32
    return %arg0, %c0_i32, %c0_i32_0 : i32, i32, i32
  }
  func.func @transform_1(%arg0: i32) -> (i32, i32) {
    %c0_i32 = arith.constant 0 : i32
    %c0_i32_0 = arith.constant 0 : i32
    %c0_i32_1 = arith.constant 0 : i32
    return %c0_i32, %c0_i32_0 : i32, i32
  }
  func.func @transform_2(%arg0: i32) -> (i32, i32) {
    %c0_i32 = arith.constant 0 : i32
    %c0_i32_0 = arith.constant 0 : i32
    %c0_i32_1 = arith.constant 0 : i32
    return %c0_i32, %c0_i32_0 : i32, i32
  }
  func.func @transform_3(%arg0: i32) -> (i32, i32, i32) {
    %c0_i32 = arith.constant 0 : i32
    %c0_i32_0 = arith.constant 0 : i32
    %c0_i32_1 = arith.constant 0 : i32
    return %arg0, %c0_i32, %c0_i32_0 : i32, i32, i32
  }
}

</mosaic_0001>

<bundles_post_ra>
// kernel: tpu_custom_call.1
= control target key start
LH: loop header
LB: loop body
LE: loop exit
PB: predicated region body
PF: predicated region fallthrough
CT: control target
= control target key end

     0   :  { %8 = vsyncpa [#allocation3], 0  ;;  %s634_s0 = inlined_call_operand.hbm [shape: f32[2,16,16], index: 0, kind: input, shape index: {}]   ;;  %s635_s1 = inlined_call_operand.vmem [shape: f32[8,16], index: 1, kind: input, shape index: {}]   ;;  %s636_s2 = inlined_call_operand.vmem [shape: f32[8,1], index: 2, kind: input, shape index: {}]   ;;  %s637_s3 = inlined_call_operand.hbm [shape: f32[2,8,16], index: 3, kind: output, shape index: {}]  }
   0x1   :  { %10 = vsyncpa [#allocation3 + $0x1], 0 }
   0x2   :  { %11 = vsyncpa [#allocation4], 0 }
   0x3   :  { %13 = vsyncpa [#allocation4 + $0x1], 0  ;;  %s498_s12 = smov 0   ;;  %s500_s13 = smov 0  }
   0x4   :  { %s502_s14 = smov 0   ;;  %s504_s15 = smov 0  }
   0x5 LB: > { %s519_s16 = sadd.s32 4294967295, %s473_s15   ;;  %s312_s17 = sadd.s32 4294967294, %s473_s15   ;;  %s473_s15 = sphi %s504_s15, %s647_s15   ;;  %s469_s14 = sphi %s502_s14, %s646_s14   ;;  %s465_s13 = sphi %s500_s13, %s645_s13   ;;  %s461_s12 = sphi %s498_s12, %s644_s12  }
   0x6   : > { %s523_s18 = sadd.s32 1, %s473_s15   ;;  %s26_s19 = sadd.s32 1, %s469_s14 }
   0x7   : > { %s23_s20 = ssub.s32 %s473_s15, %s523_s18  ;;  %p33_p0 = scmp.ne.s32.totalorder %s469_s14, %s465_s13 }
   0x8   : > { %p24_p1 = scmp.eq.s32.totalorder %s23_s20, 0  ;;  %p34_p2 = scmp.eq.s32.totalorder %s473_s15, 0 }
   0x9   : > { %p39_p3 = scmp.ne.s32.totalorder %s465_s13, %s461_s12  ;;  %p40_p4 = scmp.eq.s32.totalorder %s519_s16, 0 }
   0xa   : > { %s535_s21 = scalar_select %p24_p1, %s469_s14, %s26_s19  }
   0xb   : > { %p537_p5 = por %p34_p2, %p33_p0  ;;  %p541_p6 = por %p40_p4, %p39_p3 }
   0xc   : > { %p105_p7 = scmp.eq.s32.totalorder %s519_s16, 1  ;;  %p111_p8 = scmp.eq.s32.totalorder %s312_s17, 1 }
   0xd   : > { %p339_p10 = scmp.lt.s32.totalorder %s473_s15, 2  ;;  %s137_s26 = sand.u32 1, %s469_s14  }
   0xe   : > { %p548_p11 = por %p105_p7, %p33_p0  ;;  %p552_p12 = por %p111_p8, %p39_p3 }
   0xf   : > { %s326_s27 = sshll.u32 %s473_s15, 4  ;;  %s315_s28 = sshll.u32 %s137_s26, 4 }
  0x10   : > { %s146_s4 = scalar_lea.hbm %s634_s0, %s326_s27  ;;  %s141_s6 = scalar_lea.vmem [#allocation2], %s315_s28 }
  0x11   : > { %s147_s5 = sshll.u32 %s146_s4, 4  ;;  %s149_s7 = sshll.u32 %s141_s6, 4  ;;  %s148_s5 = int_to_ptr.hbm [resolvable:$true] %s147_s5  ;;  %s150_s7 = int_to_ptr.vmem [resolvable:$true] %s149_s7 }
  0x12   : > { %p563_p13 = pnand %p339_p10, %p537_p5  ;;  %p318_p0 = scmp.ge.s32.totalorder %s473_s15, 1 }
  0x13   : > { %p157_p1 = scmp.lt.s32.totalorder %s473_s15, 3  ;;  %s138_s9 = scalar_lea.sflag [#allocation3], %s137_s26 }
  0x14   : > { %s377_s10 = sshra.s32 %s148_s5, 4  ;;  %p381_p3 = pneg %p563_p13  ;;  %s378_s10 = int_to_ptr.hbm [resolvable:$true] %s377_s10 }
  0x15   : > { %s379_s11 = scalar_lea.hbm %s378_s10, 16  ;;  %s384_s20 = scalar_lea.hbm %s634_s0, 32 }
  0x16   : > { %p380_p2 = scmp.ne.s32.totalorder %s378_s10, %s379_s11  ;;  %p385_p5 = scmp.lt.s32.totalorder %s378_s10, %s634_s0 }
  0x17   : > { %p386_p8 = scmp.lt.s32.totalorder %s384_s20, %s379_s11 }
  0x18   : > { %p382_p4 = pnand %p381_p3, %p380_p2 }
  0x19   : > { %p387_p10 = por %p386_p8, %p385_p5 }
  0x1a   : > { %p383_p7 = pneg %p382_p4 }
  0x1c   : > { %p388_p9 = pnand %p387_p10, %p383_p7 }
  0x1e   : > { %391 = shalt.err (!%p388_p9)
}
  0x1f   : > { %s475_s26 = smov 128   ;;  %s476_s28 = smov 8  }
  0x20   : > { %334 = dma.hbm_to_vmem [thread:$0]  (!%p563_p13), %s148_s5, 256, %s150_s7, %s138_s9, %s475_s26, %s475_s26, %s476_s28  }
  0x21   : > { %p158_p2 = pnand %p318_p0, %p157_p1 }
  0x22   : > { %s584_s29 = sand.u32 (!%p158_p2), 1, %s465_s13  }
  0x23   : > { %161 = sbr.rel (%p158_p2) target bundleno = 178 (0xb2), region = 32  ;;  %s319_s30 = sshll.u32 (!%p158_p2), %s584_s29, 4 }
  0x24   : > { %s164_s4 = scalar_lea.sflag (!%p158_p2), [#allocation3], %s584_s29  ;;  %s167_s6 = scalar_lea.vmem (!%p158_p2), [#allocation2], %s319_s30 }
  0x28   : > { %452 = dma.done.wait (%p541_p6), %s164_s4, 256  }
  0x29   : > { %454 = vsyncadd (%p541_p6), %s164_s4, 4294967040  ;;  %v477_v0 = vmov 0   ;;  %v192_v1 = vld [vmem:[%s167_s6 + $0x8] sm:$0xff]  ;;  %v191_v2 = vld [vmem:[%s167_s6] sm:$0xff]  ;;  %vm200_vm0 = vcmask 130048   ;;  %s320_s23 = sshll.u32 %s584_s29, 3 }
  0x2a   : > { %376 = vset.pattern.permute.xlu0 %v477_v0  ;;  %218 = vmatpush.msra.mxu0 %v192_v1  ;;  %v193_v3 = vld [vmem:[%s635_s1] sm:$0xff]  ;;  %s323_s10 = sshll.u32 %s519_s16, 3  ;;  %s190_s20 = scalar_lea.vmem [#allocation5], %s320_s23 }
  0x2b   : > { %v194_v4 = vld [vmem:[%s636_s2] sm:$0xff]  ;;  %s237_s19 = scalar_lea.hbm %s637_s3, %s323_s10  ;;  %s239_s22 = sshll.u32 %s190_s20, 4  ;;  %s240_s22 = int_to_ptr.vmem [resolvable:$true] %s239_s22 }
  0x2c   : > { %197 = vperm.xlu0 %376, %v194_v4   ;;  %219 = vmatpush.msra.mxu0 %v191_v2  ;;  %s241_s27 = sshll.u32 %s237_s19, 4  ;;  %s227_s26 = scalar_lea.sflag [#allocation4], %s584_s29  ;;  %s242_s27 = int_to_ptr.hbm [resolvable:$true] %s241_s27 }
  0x2d   : > { %321 = vmatmul.msk.f32.vlgmr.msra.gmra.mxu0 %vm200_vm0, %v193_v3  ;;  %s421_s28 = sshra.s32 %s242_s27, 4  ;;  %s427_s6 = scalar_lea.hbm %s637_s3, 16  ;;  %s422_s28 = int_to_ptr.hbm [resolvable:$true] %s421_s28 }
  0x2e   : > { %s423_s16 = scalar_lea.hbm %s422_s28, 8  ;;  %p428_p0 = scmp.lt.s32.totalorder %s422_s28, %s637_s3 }
  0x2f   : > { %p424_p6 = scmp.ne.s32.totalorder %s422_s28, %s423_s16  ;;  %p429_p1 = scmp.lt.s32.totalorder %s427_s6, %s423_s16 }
  0x31   : > { %p425_p9 = pnand %p424_p6, %p548_p11  ;;  %p430_p3 = por %p429_p1, %p428_p0 }
  0x33   : > { %p426_p13 = pneg %p425_p9 }
  0x35   : > { %p431_p4 = pnand %p430_p3, %p426_p13 }
  0x9e   : > { %v198_v5 = vpop.permute.xlu0 %197 }
  0xaa   : > { %v221_v6 = vpop.f32.mrf.mxu0 }
  0xab   : > { %v222_v7 = vadd.f32 %v221_v6, %v198_v5 }
  0xad   : > { %v224_v8 = vmax.f32 %v222_v7, 0.0 }
  0xaf   : > { %225 = vst.msk [vmem:[%s190_s20] sm:$0xff] %vm200_vm0, %v224_v8 }
  0xb0   : > { %434 = shalt.err (!%p431_p4)
}
  0xb1   : > { %329 = dma.vmem_to_hbm [thread:$0]  (%p548_p11), %s240_s22, 128, %s242_s27, %s227_s26  }
  0xb2 PF: > { %s253_s29 = sand.u32 1, %s461_s12   ;;  %p643_p7 = scmp.ge.s32.totalorder %s473_s15, 2 }
  0xb3   : > { %s254_s8 = scalar_lea.sflag [#allocation4], %s253_s29 }
  0xb4   : > { %p336_p5 = pnand %p643_p7, %p552_p12 }
  0xb6   : > { %p337_p8 = pneg %p336_p5 }
  0xb8   : > { %456 = dma.done.wait (%p337_p8), %s254_s8, 128  }
  0xb9   : > { %458 = vsyncadd (%p337_p8), %s254_s8, 4294967168  ;;  %p16_p10 = scmp.ge.s32.totalorder %s523_s18, 4   ;;  %s644_s12 = smov %s465_s13 }
  0xba   : > { %s645_s13 = smov %s469_s14  ;;  %s646_s14 = smov %s535_s21 }
  0xbb   : > { %s647_s15 = smov %s523_s18  ;;  %18 = sbr.rel (!%p16_p10) target bundleno = 5 (0x5), region = 77 }
  0xc0   :  { %260 = vsyncpa [#allocation3], 1 }
  0xc1   :  { %262 = vsyncpa [#allocation3 + $0x1], 1 }
  0xc2   :  { %263 = vsyncpa [#allocation4], 1 }
  0xc3   :  { %265 = vsyncpa [#allocation4 + $0x1], 1 }

</bundles_post_ra>
